<compile_context>
chip_gen: v5e
topology: v5e:2x2
jax: 0.10.0
libtpu: 0.0.40
codegen_flags: <defaults>
</compile_context>

<pallas_src>
import jax
import jax.numpy as jnp
from jax.experimental import pallas as pl
from jax.experimental.pallas import tpu as pltpu

_LANE = 128


def _mlp_kernel(w1_ref, b1_ref, w2_ref, b2_ref, x_ref, o_ref):
    # Scalar-prefetch refs (SMEM): w1_ref (13,), b1_ref (13,), w2_ref (13,), b2_ref (1,)
    # x_ref / o_ref: (block_rows, 128) lane-dense tiles in VMEM.
    x = x_ref[...].astype(jnp.float32)          # accumulate in f32 always
    hidden = w1_ref.shape[0]                    # 13, static

    # Read every SMEM scalar exactly once, before the unrolled loop, so the
    # scalar->vreg splats are hoisted out of the per-vreg strip loop.
    w1 = [w1_ref[h] for h in range(hidden)]
    b1 = [b1_ref[h] for h in range(hidden)]
    w2 = [w2_ref[h] for h in range(hidden)]
    b2 = b2_ref[0]

    # Peel h = 0 and fold the output bias into it: drops the block-wide init.
    acc = w2[0] * jnp.tanh(x * w1[0] + b1[0]) + b2
    # Statically unrolled: VPU FMAs + EUP tanh, no MXU, no cross-lane XLU.
    for h in range(1, hidden):
        acc = acc + w2[h] * jnp.tanh(x * w1[h] + b1[h])

    o_ref[...] = acc.astype(o_ref.dtype)


def _dimension_semantics():
    """CORE_PARALLEL on v7x (2 TensorCores/chip); plain 'parallel' elsewhere."""
    try:
        kind = jax.devices()[0].device_kind.lower()
        if "v7" in kind or "tpu7" in kind:
            return (pltpu.CORE_PARALLEL,)
    except Exception:
        pass
    return ("parallel",)


def subclass_model_forward(x, w1, b1, w2, b2, *, block_rows=4096):
    """x: (N, 1) -> (N, 1), equivalent to the PyTorch SubclassModel forward.

    w1: (1, 13)  hidden weight (stored transposed vs torch)
    b1: (1, 13)  hidden bias
    w2: (13, 1)  output weight (stored transposed vs torch)
    b2: (1, 1)   output bias
    """
    n, in_f = x.shape
    assert in_f == 1
    hidden = w1.shape[1]
    lane = _LANE

    # --- lane-dense layout: map batch onto (rows, 128), pad only if ragged ---
    rows = pl.cdiv(n, lane)
    block_rows = max(8, min(block_rows, ((rows + 7) // 8) * 8))
    rows_padded = ((rows + block_rows - 1) // block_rows) * block_rows
    padded_total = rows_padded * lane

    if padded_total == n:
        # Fast path: pure reshape (no extra HBM copy).
        x2d = x.reshape(rows_padded, lane)
    else:
        x2d = jnp.pad(jnp.ravel(x), (0, padded_total - n)).reshape(rows_padded, lane)

    # Weights as flat scalar arrays -> SMEM via scalar prefetch.
    w1_flat = jnp.ravel(w1).astype(jnp.float32)   # (13,)
    b1_flat = jnp.ravel(b1).astype(jnp.float32)   # (13,)
    w2_flat = jnp.ravel(w2).astype(jnp.float32)   # (13,)
    b2_flat = jnp.ravel(b2).astype(jnp.float32)   # (1,)

    grid = (rows_padded // block_rows,)

    out2d = pl.pallas_call(
        _mlp_kernel,
        out_shape=jax.ShapeDtypeStruct((rows_padded, lane), x.dtype),
        grid_spec=pltpu.PrefetchScalarGridSpec(
            num_scalar_prefetch=4,
            grid=grid,
            in_specs=[
                pl.BlockSpec((block_rows, lane), lambda i, *_: (i, 0)),  # x tile
            ],
            out_specs=pl.BlockSpec((block_rows, lane), lambda i, *_: (i, 0)),
        ),
        compiler_params=pltpu.CompilerParams(
            dimension_semantics=_dimension_semantics(),
            vmem_limit_bytes=32 * 1024 * 1024,
        ),
        cost_estimate=pl.CostEstimate(
            # Account for the padded work the kernel actually performs.
            flops=4 * hidden * padded_total,
            transcendentals=hidden * padded_total,
            bytes_accessed=8 * padded_total,
        ),
    )(w1_flat, b1_flat, w2_flat, b2_flat, x2d)

    if padded_total == n:
        return out2d.reshape(n, 1)
    return out2d.reshape(-1)[:n].reshape(n, 1)


def init_params(key):
    """Deterministic init mimicking torch.nn.Linear defaults:
    U(-1/sqrt(fan_in), 1/sqrt(fan_in)) for both weight and bias."""
    k1, k2, k3, k4 = jax.random.split(key, 4)
    # hidden_linear: Linear(1, 13) -> torch weight (13, 1), stored transposed (1, 13)
    bound1 = 1.0 / jnp.sqrt(1.0)
    w1 = jax.random.uniform(k1, (1, 13), jnp.float32, -bound1, bound1)
    b1 = jax.random.uniform(k2, (1, 13), jnp.float32, -bound1, bound1)
    # output_linear: Linear(13, 1) -> torch weight (1, 13), stored transposed (13, 1)
    bound2 = 1.0 / jnp.sqrt(13.0)
    w2 = jax.random.uniform(k3, (13, 1), jnp.float32, -bound2, bound2)
    b2 = jax.random.uniform(k4, (1, 1), jnp.float32, -bound2, bound2)
    return w1, b1, w2, b2


def _reference(x, w1, b1, w2, b2):
    return jnp.tanh(x @ w1 + b1) @ w2 + b2


if __name__ == "__main__":
    key = jax.random.PRNGKey(0)
    kx, kp = jax.random.split(key)
    w1, b1, w2, b2 = init_params(kp)

    # Small batch like the book's (t_u, 1) input.
    x_small = jax.random.normal(kx, (16, 1), dtype=jnp.float32)
    out_small = jax.block_until_ready(subclass_model_forward(x_small, w1, b1, w2, b2))
    ref_small = _reference(x_small, w1, b1, w2, b2)
    assert out_small.shape == (16, 1)
    assert jnp.allclose(out_small, ref_small, atol=1e-5, rtol=1e-5)

    # Non-multiple batch size to exercise the pad/slice (ragged) path.
    x_odd = jax.random.normal(kx, (300, 1), dtype=jnp.float32)
    out_odd = jax.block_until_ready(subclass_model_forward(x_odd, w1, b1, w2, b2))
    ref_odd = _reference(x_odd, w1, b1, w2, b2)
    assert out_odd.shape == (300, 1)
    assert jnp.allclose(out_odd, ref_odd, atol=1e-5, rtol=1e-5)

    # Batch that lands exactly on a padded slab -> copy-free fast path.
    x_aligned = jax.random.normal(kx, (1024, 1), dtype=jnp.float32)
    out_aligned = jax.block_until_ready(subclass_model_forward(x_aligned, w1, b1, w2, b2))
    ref_aligned = _reference(x_aligned, w1, b1, w2, b2)
    assert out_aligned.shape == (1024, 1)
    assert jnp.allclose(out_aligned, ref_aligned, atol=1e-5, rtol=1e-5)

    print("KERNEL_OK")
</pallas_src>

<mosaic_0001>
module attributes {stable_mosaic.version = 11 : i64} {
  func.func @_mlp_kernel(%arg0: i32, %arg1: memref<13xf32, #tpu.memory_space<smem>>, %arg2: memref<13xf32, #tpu.memory_space<smem>>, %arg3: memref<13xf32, #tpu.memory_space<smem>>, %arg4: memref<1xf32, #tpu.memory_space<smem>>, %arg5: memref<8x128xf32, #tpu.memory_space<vmem>>, %arg6: memref<8x128xf32, #tpu.memory_space<vmem>>) attributes {dimension_semantics = [#tpu.dimension_semantics<parallel>], iteration_bounds = array<i64: 1>, scalar_prefetch = 4 : i64, scratch_operands = 0 : i64, tpu.core_type = #tpu.core_type<tc>, window_params = [{transform_indices = @transform_0, window_bounds = array<i64: 8, 128>}, {transform_indices = @transform_1, window_bounds = array<i64: 8, 128>}]} {
    %c0 = arith.constant 0 : index
    %c0_0 = arith.constant 0 : index
    %0 = vector.load %arg5[%c0, %c0_0] : memref<8x128xf32, #tpu.memory_space<vmem>>, vector<8x128xf32>
    %c0_1 = arith.constant 0 : index
    %1 = memref.load %arg1[%c0_1] : memref<13xf32, #tpu.memory_space<smem>>
    %c1 = arith.constant 1 : index
    %2 = memref.load %arg1[%c1] : memref<13xf32, #tpu.memory_space<smem>>
    %c2 = arith.constant 2 : index
    %3 = memref.load %arg1[%c2] : memref<13xf32, #tpu.memory_space<smem>>
    %c3 = arith.constant 3 : index
    %4 = memref.load %arg1[%c3] : memref<13xf32, #tpu.memory_space<smem>>
    %c4 = arith.constant 4 : index
    %5 = memref.load %arg1[%c4] : memref<13xf32, #tpu.memory_space<smem>>
    %c5 = arith.constant 5 : index
    %6 = memref.load %arg1[%c5] : memref<13xf32, #tpu.memory_space<smem>>
    %c6 = arith.constant 6 : index
    %7 = memref.load %arg1[%c6] : memref<13xf32, #tpu.memory_space<smem>>
    %c7 = arith.constant 7 : index
    %8 = memref.load %arg1[%c7] : memref<13xf32, #tpu.memory_space<smem>>
    %c8 = arith.constant 8 : index
    %9 = memref.load %arg1[%c8] : memref<13xf32, #tpu.memory_space<smem>>
    %c9 = arith.constant 9 : index
    %10 = memref.load %arg1[%c9] : memref<13xf32, #tpu.memory_space<smem>>
    %c10 = arith.constant 10 : index
    %11 = memref.load %arg1[%c10] : memref<13xf32, #tpu.memory_space<smem>>
    %c11 = arith.constant 11 : index
    %12 = memref.load %arg1[%c11] : memref<13xf32, #tpu.memory_space<smem>>
    %c12 = arith.constant 12 : index
    %13 = memref.load %arg1[%c12] : memref<13xf32, #tpu.memory_space<smem>>
    %c0_2 = arith.constant 0 : index
    %14 = memref.load %arg2[%c0_2] : memref<13xf32, #tpu.memory_space<smem>>
    %c1_3 = arith.constant 1 : index
    %15 = memref.load %arg2[%c1_3] : memref<13xf32, #tpu.memory_space<smem>>
    %c2_4 = arith.constant 2 : index
    %16 = memref.load %arg2[%c2_4] : memref<13xf32, #tpu.memory_space<smem>>
    %c3_5 = arith.constant 3 : index
    %17 = memref.load %arg2[%c3_5] : memref<13xf32, #tpu.memory_space<smem>>
    %c4_6 = arith.constant 4 : index
    %18 = memref.load %arg2[%c4_6] : memref<13xf32, #tpu.memory_space<smem>>
    %c5_7 = arith.constant 5 : index
    %19 = memref.load %arg2[%c5_7] : memref<13xf32, #tpu.memory_space<smem>>
    %c6_8 = arith.constant 6 : index
    %20 = memref.load %arg2[%c6_8] : memref<13xf32, #tpu.memory_space<smem>>
    %c7_9 = arith.constant 7 : index
    %21 = memref.load %arg2[%c7_9] : memref<13xf32, #tpu.memory_space<smem>>
    %c8_10 = arith.constant 8 : index
    %22 = memref.load %arg2[%c8_10] : memref<13xf32, #tpu.memory_space<smem>>
    %c9_11 = arith.constant 9 : index
    %23 = memref.load %arg2[%c9_11] : memref<13xf32, #tpu.memory_space<smem>>
    %c10_12 = arith.constant 10 : index
    %24 = memref.load %arg2[%c10_12] : memref<13xf32, #tpu.memory_space<smem>>
    %c11_13 = arith.constant 11 : index
    %25 = memref.load %arg2[%c11_13] : memref<13xf32, #tpu.memory_space<smem>>
    %c12_14 = arith.constant 12 : index
    %26 = memref.load %arg2[%c12_14] : memref<13xf32, #tpu.memory_space<smem>>
    %c0_15 = arith.constant 0 : index
    %27 = memref.load %arg3[%c0_15] : memref<13xf32, #tpu.memory_space<smem>>
    %c1_16 = arith.constant 1 : index
    %28 = memref.load %arg3[%c1_16] : memref<13xf32, #tpu.memory_space<smem>>
    %c2_17 = arith.constant 2 : index
    %29 = memref.load %arg3[%c2_17] : memref<13xf32, #tpu.memory_space<smem>>
    %c3_18 = arith.constant 3 : index
    %30 = memref.load %arg3[%c3_18] : memref<13xf32, #tpu.memory_space<smem>>
    %c4_19 = arith.constant 4 : index
    %31 = memref.load %arg3[%c4_19] : memref<13xf32, #tpu.memory_space<smem>>
    %c5_20 = arith.constant 5 : index
    %32 = memref.load %arg3[%c5_20] : memref<13xf32, #tpu.memory_space<smem>>
    %c6_21 = arith.constant 6 : index
    %33 = memref.load %arg3[%c6_21] : memref<13xf32, #tpu.memory_space<smem>>
    %c7_22 = arith.constant 7 : index
    %34 = memref.load %arg3[%c7_22] : memref<13xf32, #tpu.memory_space<smem>>
    %c8_23 = arith.constant 8 : index
    %35 = memref.load %arg3[%c8_23] : memref<13xf32, #tpu.memory_space<smem>>
    %c9_24 = arith.constant 9 : index
    %36 = memref.load %arg3[%c9_24] : memref<13xf32, #tpu.memory_space<smem>>
    %c10_25 = arith.constant 10 : index
    %37 = memref.load %arg3[%c10_25] : memref<13xf32, #tpu.memory_space<smem>>
    %c11_26 = arith.constant 11 : index
    %38 = memref.load %arg3[%c11_26] : memref<13xf32, #tpu.memory_space<smem>>
    %c12_27 = arith.constant 12 : index
    %39 = memref.load %arg3[%c12_27] : memref<13xf32, #tpu.memory_space<smem>>
    %c0_28 = arith.constant 0 : index
    %40 = memref.load %arg4[%c0_28] : memref<1xf32, #tpu.memory_space<smem>>
    %41 = vector.broadcast %1 : f32 to vector<8x128xf32>
    %42 = arith.mulf %0, %41 : vector<8x128xf32>
    %43 = vector.broadcast %14 : f32 to vector<8x128xf32>
    %44 = arith.addf %42, %43 : vector<8x128xf32>
    %45 = math.tanh %44 : vector<8x128xf32>
    %46 = vector.broadcast %27 : f32 to vector<8x128xf32>
    %47 = arith.mulf %46, %45 : vector<8x128xf32>
    %48 = vector.broadcast %40 : f32 to vector<8x128xf32>
    %49 = arith.addf %47, %48 : vector<8x128xf32>
    %50 = vector.broadcast %2 : f32 to vector<8x128xf32>
    %51 = arith.mulf %0, %50 : vector<8x128xf32>
    %52 = vector.broadcast %15 : f32 to vector<8x128xf32>
    %53 = arith.addf %51, %52 : vector<8x128xf32>
    %54 = math.tanh %53 : vector<8x128xf32>
    %55 = vector.broadcast %28 : f32 to vector<8x128xf32>
    %56 = arith.mulf %55, %54 : vector<8x128xf32>
    %57 = arith.addf %49, %56 : vector<8x128xf32>
    %58 = vector.broadcast %3 : f32 to vector<8x128xf32>
    %59 = arith.mulf %0, %58 : vector<8x128xf32>
    %60 = vector.broadcast %16 : f32 to vector<8x128xf32>
    %61 = arith.addf %59, %60 : vector<8x128xf32>
    %62 = math.tanh %61 : vector<8x128xf32>
    %63 = vector.broadcast %29 : f32 to vector<8x128xf32>
    %64 = arith.mulf %63, %62 : vector<8x128xf32>
    %65 = arith.addf %57, %64 : vector<8x128xf32>
    %66 = vector.broadcast %4 : f32 to vector<8x128xf32>
    %67 = arith.mulf %0, %66 : vector<8x128xf32>
    %68 = vector.broadcast %17 : f32 to vector<8x128xf32>
    %69 = arith.addf %67, %68 : vector<8x128xf32>
    %70 = math.tanh %69 : vector<8x128xf32>
    %71 = vector.broadcast %30 : f32 to vector<8x128xf32>
    %72 = arith.mulf %71, %70 : vector<8x128xf32>
    %73 = arith.addf %65, %72 : vector<8x128xf32>
    %74 = vector.broadcast %5 : f32 to vector<8x128xf32>
    %75 = arith.mulf %0, %74 : vector<8x128xf32>
    %76 = vector.broadcast %18 : f32 to vector<8x128xf32>
    %77 = arith.addf %75, %76 : vector<8x128xf32>
    %78 = math.tanh %77 : vector<8x128xf32>
    %79 = vector.broadcast %31 : f32 to vector<8x128xf32>
    %80 = arith.mulf %79, %78 : vector<8x128xf32>
    %81 = arith.addf %73, %80 : vector<8x128xf32>
    %82 = vector.broadcast %6 : f32 to vector<8x128xf32>
    %83 = arith.mulf %0, %82 : vector<8x128xf32>
    %84 = vector.broadcast %19 : f32 to vector<8x128xf32>
    %85 = arith.addf %83, %84 : vector<8x128xf32>
    %86 = math.tanh %85 : vector<8x128xf32>
    %87 = vector.broadcast %32 : f32 to vector<8x128xf32>
    %88 = arith.mulf %87, %86 : vector<8x128xf32>
    %89 = arith.addf %81, %88 : vector<8x128xf32>
    %90 = vector.broadcast %7 : f32 to vector<8x128xf32>
    %91 = arith.mulf %0, %90 : vector<8x128xf32>
    %92 = vector.broadcast %20 : f32 to vector<8x128xf32>
    %93 = arith.addf %91, %92 : vector<8x128xf32>
    %94 = math.tanh %93 : vector<8x128xf32>
    %95 = vector.broadcast %33 : f32 to vector<8x128xf32>
    %96 = arith.mulf %95, %94 : vector<8x128xf32>
    %97 = arith.addf %89, %96 : vector<8x128xf32>
    %98 = vector.broadcast %8 : f32 to vector<8x128xf32>
    %99 = arith.mulf %0, %98 : vector<8x128xf32>
    %100 = vector.broadcast %21 : f32 to vector<8x128xf32>
    %101 = arith.addf %99, %100 : vector<8x128xf32>
    %102 = math.tanh %101 : vector<8x128xf32>
    %103 = vector.broadcast %34 : f32 to vector<8x128xf32>
    %104 = arith.mulf %103, %102 : vector<8x128xf32>
    %105 = arith.addf %97, %104 : vector<8x128xf32>
    %106 = vector.broadcast %9 : f32 to vector<8x128xf32>
    %107 = arith.mulf %0, %106 : vector<8x128xf32>
    %108 = vector.broadcast %22 : f32 to vector<8x128xf32>
    %109 = arith.addf %107, %108 : vector<8x128xf32>
    %110 = math.tanh %109 : vector<8x128xf32>
    %111 = vector.broadcast %35 : f32 to vector<8x128xf32>
    %112 = arith.mulf %111, %110 : vector<8x128xf32>
    %113 = arith.addf %105, %112 : vector<8x128xf32>
    %114 = vector.broadcast %10 : f32 to vector<8x128xf32>
    %115 = arith.mulf %0, %114 : vector<8x128xf32>
    %116 = vector.broadcast %23 : f32 to vector<8x128xf32>
    %117 = arith.addf %115, %116 : vector<8x128xf32>
    %118 = math.tanh %117 : vector<8x128xf32>
    %119 = vector.broadcast %36 : f32 to vector<8x128xf32>
    %120 = arith.mulf %119, %118 : vector<8x128xf32>
    %121 = arith.addf %113, %120 : vector<8x128xf32>
    %122 = vector.broadcast %11 : f32 to vector<8x128xf32>
    %123 = arith.mulf %0, %122 : vector<8x128xf32>
    %124 = vector.broadcast %24 : f32 to vector<8x128xf32>
    %125 = arith.addf %123, %124 : vector<8x128xf32>
    %126 = math.tanh %125 : vector<8x128xf32>
    %127 = vector.broadcast %37 : f32 to vector<8x128xf32>
    %128 = arith.mulf %127, %126 : vector<8x128xf32>
    %129 = arith.addf %121, %128 : vector<8x128xf32>
    %130 = vector.broadcast %12 : f32 to vector<8x128xf32>
    %131 = arith.mulf %0, %130 : vector<8x128xf32>
    %132 = vector.broadcast %25 : f32 to vector<8x128xf32>
    %133 = arith.addf %131, %132 : vector<8x128xf32>
    %134 = math.tanh %133 : vector<8x128xf32>
    %135 = vector.broadcast %38 : f32 to vector<8x128xf32>
    %136 = arith.mulf %135, %134 : vector<8x128xf32>
    %137 = arith.addf %129, %136 : vector<8x128xf32>
    %138 = vector.broadcast %13 : f32 to vector<8x128xf32>
    %139 = arith.mulf %0, %138 : vector<8x128xf32>
    %140 = vector.broadcast %26 : f32 to vector<8x128xf32>
    %141 = arith.addf %139, %140 : vector<8x128xf32>
    %142 = math.tanh %141 : vector<8x128xf32>
    %143 = vector.broadcast %39 : f32 to vector<8x128xf32>
    %144 = arith.mulf %143, %142 : vector<8x128xf32>
    %145 = arith.addf %137, %144 : vector<8x128xf32>
    %c0_29 = arith.constant 0 : index
    %c0_30 = arith.constant 0 : index
    %146 = vector.load %arg6[%c0_29, %c0_30] : memref<8x128xf32, #tpu.memory_space<vmem>>, vector<8x128xf32>
    tpu.vector_store %arg6[%c0_29, %c0_30], %145 {strides = array<i32>} : memref<8x128xf32, #tpu.memory_space<vmem>>, vector<8x128xf32>,
    return
  }
  func.func @transform_0(%arg0: i32, %arg1: memref<13xf32, #tpu.memory_space<smem>>, %arg2: memref<13xf32, #tpu.memory_space<smem>>, %arg3: memref<13xf32, #tpu.memory_space<smem>>, %arg4: memref<1xf32, #tpu.memory_space<smem>>) -> (i32, i32) {
    %c0_i32 = arith.constant 0 : i32
    %c0_i32_0 = arith.constant 0 : i32
    return %arg0, %c0_i32 : i32, i32
  }
  func.func @transform_1(%arg0: i32, %arg1: memref<13xf32, #tpu.memory_space<smem>>, %arg2: memref<13xf32, #tpu.memory_space<smem>>, %arg3: memref<13xf32, #tpu.memory_space<smem>>, %arg4: memref<1xf32, #tpu.memory_space<smem>>) -> (i32, i32) {
    %c0_i32 = arith.constant 0 : i32
    %c0_i32_0 = arith.constant 0 : i32
    return %arg0, %c0_i32 : i32, i32
  }
}

</mosaic_0001>

<bundles_post_ra>
// kernel: tpu_custom_call.1
= control target key start
LH: loop header
LB: loop body
LE: loop exit
PB: predicated region body
PF: predicated region fallthrough
CT: control target
= control target key end

     0   :  { %s367_s24 = smov [#allocation3]   ;;  %s368_s25 = smov [#allocation4]   ;;  %s525_s0 = inlined_call_operand.vmem [shape: f32[13], index: 0, kind: input, shape index: {}]   ;;  %s526_s3 = inlined_call_operand.<no memory space> [shape: f32[1], index: 3, kind: input, shape index: {}]   ;;  %s527_s4 = inlined_call_operand.hbm [shape: f32[8,128], index: 4, kind: input, shape index: {}]   ;;  %s528_s5 = inlined_call_operand.hbm [shape: f32[8,128], index: 5, kind: output, shape index: {}]   ;;  %s529_s1 = inlined_call_operand.vmem [shape: f32[13], index: 1, kind: input, shape index: {}]   ;;  %s530_s2 = inlined_call_operand.vmem [shape: f32[13], index: 2, kind: input, shape index: {}]  }
   0x1   :  { %s11_s20 = sshll.u32 %s525_s0, 4  ;;  %s16_s23 = sshll.u32 %s529_s1, 4  ;;  %s12_s20 = int_to_ptr.vmem [resolvable:$true] %s11_s20  ;;  %s17_s23 = int_to_ptr.vmem [resolvable:$true] %s16_s23 }
   0x2   :  { %14 = dma.vmem_to_smem %s12_s20, 16, %s367_s24, [#allocation2] }
   0x3   :  { %19 = dma.vmem_to_smem %s17_s23, 16, %s368_s25, [#allocation2] }
   0x4   :  { %s21_s28 = sshll.u32 %s530_s2, 4  ;;  %s369_s29 = smov [#allocation5]   ;;  %s22_s28 = int_to_ptr.vmem [resolvable:$true] %s21_s28 }
   0x5   :  { %24 = dma.vmem_to_smem %s22_s28, 16, %s369_s29, [#allocation2] }
   0x6   :  { %361 = dma.done.wait [#allocation2], 48 }
   0x7   :  { %362 = vsyncadd [#allocation2], 4294967248 }
   0x8   :  { %28 = sfence }
   0x9   :  { %29 = vsyncpa [#allocation8], 0 }
   0xa   :  { %30 = vsyncpa [#allocation9], 0  ;;  %s36_s30 = sshll.u32 %s527_s4, 4  ;;  %s370_s6 = smov [#allocation7]   ;;  %s37_s30 = int_to_ptr.hbm [resolvable:$true] %s36_s30 }
   0xb   :  { %s38_s7 = sshll.u32 %s370_s6, 4  ;;  %s39_s7 = int_to_ptr.vmem [resolvable:$true] %s38_s7 }
   0xc   :  { %41 = dma.hbm_to_vmem [thread:$0]  %s37_s30, 128, %s39_s7, [#allocation8]  }
   0xd   :  { %363 = dma.done.wait [#allocation8], 128  }
   0xe   :  { %364 = vsyncadd [#allocation8], 4294967168  ;;  %s47_s2 = sld [smem:[#allocation3]]  ;;  %v434_v0 = vld [vmem:[#allocation7] sm:$0xff]  ;;  %v94_v38 = vstv %s526_s3 }
   0xf   :  { %s210_s8 = sld [smem:[#allocation3 + $0x1]] }
  0x10   :  { %s211_s9 = sld [smem:[#allocation3 + $0x2]] }
  0x11   :  { %s414_s10 = sld [smem:[#allocation3 + $0x3]] }
  0x12   :  { %s416_s11 = sld [smem:[#allocation3 + $0x4]] }
  0x13   :  { %s418_s12 = sld [smem:[#allocation3 + $0x5]] }
  0x14   :  { %s420_s13 = sld [smem:[#allocation3 + $0x6]]  ;;  %v87_v1 = vstv %s47_s2 }
  0x15   :  { %s422_s14 = sld [smem:[#allocation3 + $0x7]]  ;;  %v96_v2 = vstv %s210_s8  ;;  %v88_v4 = vmul.f32 %v87_v1, %v434_v0 }
  0x16   :  { %s424_s4 = sld [smem:[#allocation3 + $0x8]]  ;;  %v104_v3 = vstv %s211_s9  ;;  %v97_v5 = vmul.f32 %v96_v2, %v434_v0 }
  0x17   :  { %s426_s15 = sld [smem:[#allocation3 + $0x9]]  ;;  %v112_v6 = vstv %s414_s10  ;;  %v105_v7 = vmul.f32 %v104_v3, %v434_v0 }
  0x18   :  { %s428_s16 = sld [smem:[#allocation3 + $0xa]]  ;;  %v120_v9 = vstv %s416_s11  ;;  %v113_v12 = vmul.f32 %v112_v6, %v434_v0 }
  0x19   :  { %s430_s17 = sld [smem:[#allocation3 + $0xb]]  ;;  %v128_v15 = vstv %s418_s12  ;;  %v121_v18 = vmul.f32 %v120_v9, %v434_v0 }
  0x1a   :  { %s432_s18 = sld [smem:[#allocation3 + $0xc]]  ;;  %v136_v20 = vstv %s420_s13  ;;  %v129_v22 = vmul.f32 %v128_v15, %v434_v0 }
  0x1b   :  { %s60_s19 = sld [smem:[#allocation4]]  ;;  %v144_v23 = vstv %s422_s14  ;;  %v137_v26 = vmul.f32 %v136_v20, %v434_v0 }
  0x1c   :  { %s222_s20 = sld [smem:[#allocation4 + $0x1]]  ;;  %v145_v28 = vmul.f32 %v144_v23, %v434_v0  ;;  %v152_v29 = vstv %s424_s4 }
  0x1d   :  { %s223_s21 = sld [smem:[#allocation4 + $0x2]]  ;;  %v160_v31 = vstv %s426_s15  ;;  %v153_v36 = vmul.f32 %v152_v29, %v434_v0 }
  0x1e   :  { %s224_s22 = sld [smem:[#allocation4 + $0x3]]  ;;  %v168_v32 = vstv %s428_s16  ;;  %v161_v40 = vmul.f32 %v160_v31, %v434_v0 }
  0x1f   :  { %s437_s23 = sld [smem:[#allocation4 + $0x4]]  ;;  %v169_v41 = vmul.f32 %v168_v32, %v434_v0  ;;  %v176_v45 = vstv %s430_s17  ;;  %s371_s17 = smov [#allocation10]  }
  0x20   :  { %s441_s24 = sld [smem:[#allocation4 + $0x5]]  ;;  %v184_v49 = vstv %s432_s18  ;;  %v177_v61 = vmul.f32 %v176_v45, %v434_v0  ;;  %s198_s18 = sshll.u32 %s371_s17, 4  ;;  %s199_s18 = int_to_ptr.vmem [resolvable:$true] %s198_s18 }
  0x21   :  { %s444_s25 = sld [smem:[#allocation4 + $0x6]]  ;;  %v89_v8 = vstv %s60_s19 }
  0x22   :  { %s447_s26 = sld [smem:[#allocation4 + $0x7]]  ;;  %v90_v10 = vadd.f32 %v89_v8, %v88_v4  ;;  %v98_v11 = vstv %s222_s20 }
  0x23   :  { %s450_s27 = sld [smem:[#allocation4 + $0x8]]  ;;  %v99_v13 = vadd.f32 %v98_v11, %v97_v5  ;;  %v106_v14 = vstv %s223_s21  ;;  %v185_v5 = vmul.f32 %v184_v49, %v434_v0  ;;  %s200_s21 = sshll.u32 %s528_s5, 4  ;;  %s201_s21 = int_to_ptr.hbm [resolvable:$true] %s200_s21 }
  0x24   :  { %s453_s28 = sld [smem:[#allocation4 + $0x9]]  ;;  %v107_v16 = vadd.f32 %v106_v14, %v105_v7  ;;  %v114_v17 = vstv %s224_s22  ;;  %251 = vtanh.f32 %v90_v10 }
  0x25   :  { %s456_s29 = sld [smem:[#allocation4 + $0xa]]  ;;  %v122_v19 = vstv %s437_s23  ;;  %v115_v21 = vadd.f32 %v114_v17, %v113_v12  ;;  %253 = vtanh.f32 %v99_v13 }
  0x26   :  { %s460_s0 = sld [smem:[#allocation4 + $0xb]]  ;;  %v130_v24 = vstv %s441_s24  ;;  %255 = vtanh.f32 %v107_v16  ;;  %v123_v25 = vadd.f32 %v122_v19, %v121_v18 }
  0x27   :  { %s464_s1 = sld [smem:[#allocation4 + $0xc]]  ;;  %v138_v27 = vstv %s444_s25  ;;  %257 = vtanh.f32 %v115_v21  ;;  %v131_v30 = vadd.f32 %v130_v24, %v129_v22 }
  0x28   :  { %s467_s30 = sld [smem:[#allocation5]]  ;;  %v146_v33 = vstv %s447_s26  ;;  %259 = vtanh.f32 %v123_v25  ;;  %v139_v35 = vadd.f32 %v138_v27, %v137_v26 }
  0x29   :  { %s470_s6 = sld [smem:[#allocation5 + $0x1]]  ;;  %v154_v39 = vstv %s450_s27  ;;  %261 = vtanh.f32 %v131_v30  ;;  %v147_v44 = vadd.f32 %v146_v33, %v145_v28 }
  0x2a   :  { %s475_s7 = sld [smem:[#allocation5 + $0x2]]  ;;  %v252_v34 = vpop.eup %251  ;;  %v162_v48 = vstv %s453_s28  ;;  %263 = vtanh.f32 %v139_v35  ;;  %v155_v53 = vadd.f32 %v154_v39, %v153_v36 }
  0x2b   :  { %s479_s2 = sld [smem:[#allocation5 + $0x3]]  ;;  %v254_v37 = vpop.eup %253  ;;  %v170_v57 = vstv %s456_s29  ;;  %265 = vtanh.f32 %v147_v44  ;;  %v163_v60 = vadd.f32 %v162_v48, %v161_v40 }
  0x2c   :  { %s482_s8 = sld [smem:[#allocation5 + $0x4]]  ;;  %v256_v42 = vpop.eup %255  ;;  %v178_v1 = vstv %s460_s0  ;;  %267 = vtanh.f32 %v155_v53  ;;  %v171_v4 = vadd.f32 %v170_v57, %v169_v41 }
  0x2d   :  { %s485_s9 = sld [smem:[#allocation5 + $0x5]]  ;;  %v258_v50 = vpop.eup %257  ;;  %v186_v8 = vstv %s464_s1  ;;  %269 = vtanh.f32 %v163_v60  ;;  %v179_v11 = vadd.f32 %v178_v1, %v177_v61 }
  0x2e   :  { %s493_s12 = sld [smem:[#allocation5 + $0x6]]  ;;  %v92_v43 = vstv %s467_s30  ;;  %v260_v58 = vpop.eup %259  ;;  %271 = vtanh.f32 %v171_v4  ;;  %v187_v16 = vadd.f32 %v186_v8, %v185_v5 }
  0x2f   :  { %v93_v46 = vmul.f32 %v252_v34, %v92_v43  ;;  %v101_v47 = vstv %s470_s6  ;;  %s500_s3 = sld [smem:[#allocation5 + $0x7]]  ;;  %v262_v2 = vpop.eup %261  ;;  %273 = vtanh.f32 %v179_v11 }
  0x30   :  { %v102_v51 = vmul.f32 %v254_v37, %v101_v47  ;;  %v109_v52 = vstv %s475_s7  ;;  %s505_s13 = sld [smem:[#allocation5 + $0x8]]  ;;  %v264_v9 = vpop.eup %263  ;;  %275 = vtanh.f32 %v187_v16 }
  0x31   :  { %v95_v54 = vadd.f32 %v94_v38, %v93_v46  ;;  %v110_v55 = vmul.f32 %v256_v42, %v109_v52  ;;  %v117_v56 = vstv %s479_s2  ;;  %s510_s14 = sld [smem:[#allocation5 + $0x9]]  ;;  %v266_v14 = vpop.eup %265 }
  0x32   :  { %v125_v59 = vstv %s482_s8  ;;  %v118_v63 = vmul.f32 %v258_v50, %v117_v56  ;;  %s515_s4 = sld [smem:[#allocation5 + $0xa]]  ;;  %v268_v18 = vpop.eup %267 }
  0x33   :  { %v103_v62 = vadd.f32 %v102_v51, %v95_v54  ;;  %v133_v3 = vstv %s485_s9  ;;  %v126_v7 = vmul.f32 %v260_v58, %v125_v59  ;;  %s244_s15 = sld [smem:[#allocation5 + $0xb]]  ;;  %v270_v22 = vpop.eup %269 }
  0x34   :  { %v141_v10 = vstv %s493_s12  ;;  %v134_v13 = vmul.f32 %v262_v2, %v133_v3  ;;  %s245_s16 = sld [smem:[#allocation5 + $0xc]]  ;;  %v272_v26 = vpop.eup %271 }
  0x35   :  { %v111_v6 = vadd.f32 %v110_v55, %v103_v62  ;;  %v149_v15 = vstv %s500_s3  ;;  %v142_v17 = vmul.f32 %v264_v9, %v141_v10  ;;  %v274_v30 = vpop.eup %273 }
  0x36   :  { %v157_v19 = vstv %s505_s13  ;;  %v150_v21 = vmul.f32 %v266_v14, %v149_v15  ;;  %v276_v34 = vpop.eup %275 }
  0x37   :  { %v119_v12 = vadd.f32 %v118_v63, %v111_v6  ;;  %v165_v23 = vstv %s510_s14  ;;  %v158_v25 = vmul.f32 %v268_v18, %v157_v19 }
  0x38   :  { %v173_v27 = vstv %s515_s4  ;;  %v166_v29 = vmul.f32 %v270_v22, %v165_v23 }
  0x39   :  { %v127_v0 = vadd.f32 %v126_v7, %v119_v12  ;;  %v181_v31 = vstv %s244_s15  ;;  %v174_v33 = vmul.f32 %v272_v26, %v173_v27 }
  0x3a   :  { %v189_v35 = vstv %s245_s16  ;;  %v182_v37 = vmul.f32 %v274_v30, %v181_v31 }
  0x3b   :  { %v135_v20 = vadd.f32 %v134_v13, %v127_v0  ;;  %v190_v39 = vmul.f32 %v276_v34, %v189_v35 }
  0x3d   :  { %v143_v24 = vadd.f32 %v142_v17, %v135_v20 }
  0x3f   :  { %v151_v28 = vadd.f32 %v150_v21, %v143_v24 }
  0x41   :  { %v159_v32 = vadd.f32 %v158_v25, %v151_v28 }
  0x43   :  { %v167_v36 = vadd.f32 %v166_v29, %v159_v32 }
  0x45   :  { %v175_v38 = vadd.f32 %v174_v33, %v167_v36 }
  0x47   :  { %v183_v40 = vadd.f32 %v182_v37, %v175_v38 }
  0x49   :  { %v191_v41 = vadd.f32 %v190_v39, %v183_v40 }
  0x4b   :  { %192 = vst [vmem:[#allocation10] sm:$0xff] %v191_v41 }
  0x4c   :  { %203 = dma.vmem_to_hbm [thread:$0]  %s199_s18, 128, %s201_s21, [#allocation9]  }
  0x4d   :  { %365 = dma.done.wait [#allocation9], 128  }
  0x4e   :  { %366 = vsyncadd [#allocation9], 4294967168 }
  0x4f   :  { %208 = vsyncpa [#allocation8], 1 }
  0x50   :  { %209 = vsyncpa [#allocation9], 1 }

</bundles_post_ra>
